<compile_context>
chip_gen: v6e
topology: v6e:2x2x1
jax: 0.10.0
libtpu: 0.0.40
codegen_flags: <defaults>
</compile_context>

<pallas_src>
import functools

import jax
import jax.numpy as jnp
from jax.experimental import pallas as pl
from jax.experimental.pallas import tpu as pltpu


def _round_up(v, m):
    return ((v + m - 1) // m) * m


def _device_kind():
    try:
        return jax.devices()[0].device_kind.lower()
    except Exception:
        return ""


def _default_compute_dtype():
    # bf16 VPU/EUP paths exist on v6e/v7x; v5e (and unknown devices) stay f32.
    kind = _device_kind()
    if ("v6" in kind) or ("v7" in kind):
        return jnp.bfloat16
    return jnp.float32


def _min_grid_steps():
    # v7x has 2 TensorCores per chip; keep >= 2 "parallel" grid steps so the
    # second core gets work instead of collapsing to a single tile.
    return 2 if "v7" in _device_kind() else 1


def fitter_kernel(x_ref, w1_ref, b1_ref, w2_ref, b2_ref, y_ref, *, compute_dtype):
    # x_ref:  (1, TN)  batch tile, N on the lane axis
    # w1_ref: (H, 1)   fc1.weight            (resident VMEM, f32)
    # b1_ref: (H, 1)   fc1.bias              (resident VMEM, f32)
    # w2_ref: (H, 1)   fc2.weight transposed (resident VMEM, f32)
    # b2_ref: (1, 1)   fc2.bias              (SMEM scalar)
    # y_ref:  (1, TN)  lane-dense output tile (f32)
    x = x_ref[...].astype(compute_dtype)              # (1, TN)
    w1 = w1_ref[...].astype(compute_dtype)            # (H, 1)
    b1 = b1_ref[...].astype(compute_dtype)            # (H, 1)

    # fc1: broadcast multiply-add (K == 1 -> VPU, no degenerate MXU matmul).
    pre = w1 * x + b1                                  # (H, TN)

    # sigmoid(z) = 0.5 * (tanh(z / 2) + 1): a single EUP push per element.
    hidden = 0.5 * (jnp.tanh(0.5 * pre) + 1.0)         # (H, TN)

    # fc2: VPU multiply + XLU sublane reduce over H, accumulated in f32.
    w2 = w2_ref[...]                                   # (H, 1), f32
    acc = jnp.sum(hidden.astype(jnp.float32) * w2, axis=0, keepdims=True)
    y_ref[...] = acc + b2_ref[0, 0]                    # (1, TN)


def _fitter_ref(x, fc1_w, fc1_b, fc2_w, fc2_b):
    hidden = jax.nn.sigmoid(x @ fc1_w.T + fc1_b)
    return hidden @ fc2_w.T + fc2_b


def fitter_forward(x, fc1_w, fc1_b, fc2_w, fc2_b, *,
                   block_n=None, compute_dtype=None, min_pallas_n=4096,
                   lane_dense_output=False):
    """Forward pass of Fitter.

    x:     (N, 1) float32
    fc1_w: (H, 1), fc1_b: (H,), fc2_w: (1, H), fc2_b: (1,)  (PyTorch Linear layout)
    returns y: (N, 1) float32, or lane-dense (1, N) if lane_dense_output=True.
    """
    n = x.shape[0]
    h = fc1_w.shape[0]

    # Small-N fast path: pallas_call launch overhead dominates ~KB of work.
    if n < min_pallas_n:
        y = _fitter_ref(x.astype(jnp.float32), fc1_w.astype(jnp.float32),
                        fc1_b.astype(jnp.float32), fc2_w.astype(jnp.float32),
                        fc2_b.astype(jnp.float32))
        return y.reshape(1, n) if lane_dense_output else y

    if compute_dtype is None:
        compute_dtype = _default_compute_dtype()

    if block_n is None:
        # One big tile (<= 8192 lanes); keep >= 2 parallel steps on v7x.
        # Well under the 16 MiB v5e scoped-VMEM default at TN = 8192.
        block_n = max(128, min(8192, _round_up(pl.cdiv(n, _min_grid_steps()), 128)))

    # Lane-dense layout: N on the last (128-lane) axis.  No padding: the ragged
    # last block is masked by Pallas (OOB writes dropped, garbage lanes unused).
    x_t = x.astype(jnp.float32).reshape(1, n)

    w1 = fc1_w.reshape(h, 1).astype(jnp.float32)
    b1 = fc1_b.reshape(h, 1).astype(jnp.float32)
    w2 = fc2_w.reshape(h, 1).astype(jnp.float32)       # (1, H) -> (H, 1)
    b2 = fc2_b.reshape(1, 1).astype(jnp.float32)

    grid = (pl.cdiv(n, block_n),)
    y_t = pl.pallas_call(
        functools.partial(fitter_kernel, compute_dtype=compute_dtype),
        out_shape=jax.ShapeDtypeStruct((1, n), jnp.float32),
        grid=grid,
        in_specs=[
            pl.BlockSpec((1, block_n), lambda i: (0, i)),        # x tile over N
            pl.BlockSpec((h, 1), lambda i: (0, 0)),              # fc1.weight (resident)
            pl.BlockSpec((h, 1), lambda i: (0, 0)),              # fc1.bias   (resident)
            pl.BlockSpec((h, 1), lambda i: (0, 0)),              # fc2.weight (resident)
            pl.BlockSpec(memory_space=pltpu.MemorySpace.SMEM),   # fc2.bias scalar
        ],
        out_specs=pl.BlockSpec((1, block_n), lambda i: (0, i)),
        compiler_params=pltpu.CompilerParams(
            dimension_semantics=("parallel",),                   # megacore-shardable
        ),
    )(x_t, w1, b1, w2, b2)

    if lane_dense_output:
        return y_t
    # Single relayout back to the PyTorch (N, 1) convention at the boundary.
    return y_t.reshape(n, 1)


if __name__ == "__main__":
    num_hidden_nodes = 32   # H
    batch = 1000            # N (not a multiple of 128: exercises the ragged block)

    key = jax.random.PRNGKey(0)
    k_x, k_w1, k_b1, k_w2, k_b2 = jax.random.split(key, 5)

    # Deterministic parameters in the nn.Linear(1,H) / nn.Linear(H,1) layout.
    fc1_w = jax.random.normal(k_w1, (num_hidden_nodes, 1), dtype=jnp.float32) * 0.5
    fc1_b = jax.random.normal(k_b1, (num_hidden_nodes,), dtype=jnp.float32) * 0.1
    fc2_w = jax.random.normal(k_w2, (1, num_hidden_nodes), dtype=jnp.float32) * 0.5
    fc2_b = jax.random.normal(k_b2, (1,), dtype=jnp.float32) * 0.1

    x = jax.random.normal(k_x, (batch, 1), dtype=jnp.float32)

    # Pure-JAX reference of the PyTorch forward semantics.
    y_ref = _fitter_ref(x, fc1_w, fc1_b, fc2_w, fc2_b)

    # 1) Pallas path, f32 compute (min_pallas_n=0 forces past the small-N fast path).
    y_f32 = fitter_forward(x, fc1_w, fc1_b, fc2_w, fc2_b,
                           compute_dtype=jnp.float32, min_pallas_n=0)
    jax.block_until_ready(y_f32)
    assert y_f32.shape == (batch, 1)
    assert jnp.allclose(y_f32, y_ref, atol=1e-5, rtol=1e-5)

    # 2) Pallas path, auto compute dtype (bf16 on v6e/v7x -> looser tolerance).
    y_auto = fitter_forward(x, fc1_w, fc1_b, fc2_w, fc2_b, min_pallas_n=0)
    jax.block_until_ready(y_auto)
    tol = 1e-5 if _default_compute_dtype() == jnp.float32 else 1e-1
    assert jnp.allclose(y_auto, y_ref, atol=tol, rtol=tol)

    # 3) Small-N fast path (plain JAX, no pallas_call launch).
    y_small = fitter_forward(x[:8], fc1_w, fc1_b, fc2_w, fc2_b)
    jax.block_until_ready(y_small)
    assert y_small.shape == (8, 1)
    assert jnp.allclose(y_small, y_ref[:8], atol=1e-5, rtol=1e-5)

    print("KERNEL_OK")
</pallas_src>

<mosaic_0001>
module attributes {stable_mosaic.version = 11 : i64} {
  func.func @fitter_kernel(%arg0: i32, %arg1: memref<1x1024xf32, #tpu.memory_space<vmem>>, %arg2: memref<32x1xf32, #tpu.memory_space<vmem>>, %arg3: memref<32x1xf32, #tpu.memory_space<vmem>>, %arg4: memref<32x1xf32, #tpu.memory_space<vmem>>, %arg5: memref<1x1xf32, #tpu.memory_space<smem>>, %arg6: memref<1x1024xf32, #tpu.memory_space<vmem>>) attributes {dimension_semantics = [#tpu.dimension_semantics<parallel>], iteration_bounds = array<i64: 1>, scalar_prefetch = 0 : i64, scratch_operands = 0 : i64, tpu.core_type = #tpu.core_type<tc>, window_params = [{transform_indices = @transform_0, window_bounds = array<i64: 1, 1024>}, {pipeline_mode = #tpu.pipeline_mode<synchronous>, transform_indices = @transform_1, window_bounds = array<i64: 32, 1>}, {pipeline_mode = #tpu.pipeline_mode<synchronous>, transform_indices = @transform_2, window_bounds = array<i64: 32, 1>}, {pipeline_mode = #tpu.pipeline_mode<synchronous>, transform_indices = @transform_3, window_bounds = array<i64: 32, 1>}, {transform_indices = @transform_4, window_bounds = array<i64: 1, 1>}, {transform_indices = @transform_5, window_bounds = array<i64: 1, 1024>}]} {
    %c0 = arith.constant 0 : index
    %c0_0 = arith.constant 0 : index
    %0 = vector.load %arg1[%c0, %c0_0] : memref<1x1024xf32, #tpu.memory_space<vmem>>, vector<1x1024xf32>
    %c0_1 = arith.constant 0 : index
    %c0_2 = arith.constant 0 : index
    %1 = vector.load %arg2[%c0_1, %c0_2] : memref<32x1xf32, #tpu.memory_space<vmem>>, vector<32x1xf32>
    %c0_3 = arith.constant 0 : index
    %c0_4 = arith.constant 0 : index
    %2 = vector.load %arg3[%c0_3, %c0_4] : memref<32x1xf32, #tpu.memory_space<vmem>>, vector<32x1xf32>
    %3 = vector.broadcast %1 : vector<32x1xf32> to vector<32x1024xf32>
    %4 = vector.broadcast %0 : vector<1x1024xf32> to vector<32x1024xf32>
    %5 = arith.mulf %3, %4 : vector<32x1024xf32>
    %6 = vector.broadcast %2 : vector<32x1xf32> to vector<32x1024xf32>
    %7 = arith.addf %5, %6 : vector<32x1024xf32>
    %cst = arith.constant 5.000000e-01 : f32
    %8 = vector.broadcast %cst : f32 to vector<32x1024xf32>
    %9 = arith.mulf %8, %7 : vector<32x1024xf32>
    %10 = math.tanh %9 : vector<32x1024xf32>
    %cst_5 = arith.constant 1.000000e+00 : f32
    %11 = vector.broadcast %cst_5 : f32 to vector<32x1024xf32>
    %12 = arith.addf %10, %11 : vector<32x1024xf32>
    %cst_6 = arith.constant 5.000000e-01 : f32
    %13 = vector.broadcast %cst_6 : f32 to vector<32x1024xf32>
    %14 = arith.mulf %13, %12 : vector<32x1024xf32>
    %c0_7 = arith.constant 0 : index
    %c0_8 = arith.constant 0 : index
    %15 = vector.load %arg4[%c0_7, %c0_8] : memref<32x1xf32, #tpu.memory_space<vmem>>, vector<32x1xf32>
    %16 = vector.broadcast %15 : vector<32x1xf32> to vector<32x1024xf32>
    %17 = arith.mulf %14, %16 : vector<32x1024xf32>
    %cst_9 = arith.constant dense<0.000000e+00> : vector<1024xf32>
    %18 = vector.multi_reduction <add>, %17, %cst_9 [0] : vector<32x1024xf32> to vector<1024xf32>
    %19 = vector.shape_cast %18 : vector<1024xf32> to vector<1x1024xf32>
    %c0_10 = arith.constant 0 : index
    %c0_11 = arith.constant 0 : index
    %20 = memref.load %arg5[%c0_10, %c0_11] : memref<1x1xf32, #tpu.memory_space<smem>>
    %21 = vector.broadcast %20 : f32 to vector<1x1024xf32>
    %22 = arith.addf %19, %21 : vector<1x1024xf32>
    %c0_12 = arith.constant 0 : index
    %c0_13 = arith.constant 0 : index
    %23 = vector.load %arg6[%c0_12, %c0_13] : memref<1x1024xf32, #tpu.memory_space<vmem>>, vector<1x1024xf32>
    tpu.vector_store %arg6[%c0_12, %c0_13], %22 {strides = array<i32>} : memref<1x1024xf32, #tpu.memory_space<vmem>>, vector<1x1024xf32>,
    return
  }
  func.func @transform_0(%arg0: i32) -> (i32, i32) {
    %c0_i32 = arith.constant 0 : i32
    %c0_i32_0 = arith.constant 0 : i32
    return %c0_i32, %arg0 : i32, i32
  }
  func.func @transform_1(%arg0: i32) -> (i32, i32) {
    %c0_i32 = arith.constant 0 : i32
    %c0_i32_0 = arith.constant 0 : i32
    %c0_i32_1 = arith.constant 0 : i32
    return %c0_i32, %c0_i32_0 : i32, i32
  }
  func.func @transform_2(%arg0: i32) -> (i32, i32) {
    %c0_i32 = arith.constant 0 : i32
    %c0_i32_0 = arith.constant 0 : i32
    %c0_i32_1 = arith.constant 0 : i32
    return %c0_i32, %c0_i32_0 : i32, i32
  }
  func.func @transform_3(%arg0: i32) -> (i32, i32) {
    %c0_i32 = arith.constant 0 : i32
    %c0_i32_0 = arith.constant 0 : i32
    %c0_i32_1 = arith.constant 0 : i32
    return %c0_i32, %c0_i32_0 : i32, i32
  }
  func.func @transform_4(%arg0: i32) -> (i32, i32) {
    %c0_i32 = arith.constant 0 : i32
    %c0_i32_0 = arith.constant 0 : i32
    %c0_i32_1 = arith.constant 0 : i32
    return %c0_i32, %c0_i32_0 : i32, i32
  }
  func.func @transform_5(%arg0: i32) -> (i32, i32) {
    %c0_i32 = arith.constant 0 : i32
    %c0_i32_0 = arith.constant 0 : i32
    return %c0_i32, %arg0 : i32, i32
  }
}

</mosaic_0001>

<bundles_post_ra>
// kernel: tpu_custom_call.1
= control target key start
LH: loop header
LB: loop body
LE: loop exit
PB: predicated region body
PF: predicated region fallthrough
CT: control target
= control target key end

     0   :  { %v606_v2 = vmov 0   ;;  %s747_s0 = inlined_call_operand.vmem [shape: f32[1,1000], index: 0, kind: input, shape index: {}]   ;;  %s748_s1 = inlined_call_operand.vmem [shape: f32[32,1], index: 1, kind: input, shape index: {}]   ;;  %s749_s2 = inlined_call_operand.vmem [shape: f32[32,1], index: 2, kind: input, shape index: {}]   ;;  %s750_s3 = inlined_call_operand.vmem [shape: f32[32,1], index: 3, kind: input, shape index: {}]   ;;  %s751_s4 = inlined_call_operand.<no memory space> [shape: f32[1,1], index: 4, kind: input, shape index: {}]   ;;  %s752_s5 = inlined_call_operand.hbm [shape: f32[1,1000], index: 5, kind: output, shape index: {}]  }
   0x1   :  { %v25_v0 = vld [vmem:[%s748_s1 + $0x10] sm:$0xff]  ;;  %v23_v1 = vld [vmem:[%s748_s1] sm:$0xff]  ;;  %519 = vset.pattern.permute.xlu1 %v606_v2  ;;  %518 = vset.pattern.permute.xlu0 %v606_v2  ;;  %v24_v4 = vld [vmem:[%s748_s1 + $0x8] sm:$0xff] }
   0x2   :  { %43 = vperm.xlu1 %519, %v25_v0   ;;  %33 = vperm.xlu0 %518, %v23_v1   ;;  %v27_v3 = vld [vmem:[%s749_s2] sm:$0xff] }
   0x3   :  { %11 = vsyncpa [#allocation4], 0  ;;  %v26_v5 = vld [vmem:[%s748_s1 + $0x18] sm:$0xff]  ;;  %v28_v6 = vld [vmem:[%s749_s2 + $0x8] sm:$0xff]  ;;  %v52_v13 = vlaneseq  ;;  %v607_v15 = vmov 1966171168   ;;  %v681_v37 = vstv %s751_s4 }
   0x4   :  { %v30_v7 = vld [vmem:[%s749_s2 + $0x18] sm:$0xff]  ;;  %v29_v8 = vld [vmem:[%s749_s2 + $0x10] sm:$0xff]  ;;  %v305_v9 = vld [vmem:[%s750_s3 + $0x8] sm:$0xff]  ;;  %v455_v16 = vunpack.c.l.s4 %v607_v15 }
   0x5   :  { %v304_v10 = vld [vmem:[%s750_s3] sm:$0xff]  ;;  %v307_v11 = vld [vmem:[%s750_s3 + $0x18] sm:$0xff]  ;;  %v306_v12 = vld [vmem:[%s750_s3 + $0x10] sm:$0xff]  ;;  %v53_v14 = vshrl.u32 %v52_v13, 7 }
   0x6   :  { %126 = vperm.xlu1 %519, %v27_v3   ;;  %38 = vperm.xlu0 %518, %v24_v4   ;;  %v22_v23 = vld [vmem:[%s747_s0] sm:$0xff]  ;;  %v456_v26 = vunpack.c.0.s8 %v455_v16  ;;  %s608_s0 = smov [#allocation3]  }
   0x7   :  { %v54_v17 = vsub.s32 0, %v53_v14  ;;  %v58_v18 = vsub.s32 1, %v53_v14  ;;  %v62_v19 = vsub.s32 2, %v53_v14  ;;  %v66_v20 = vsub.s32 3, %v53_v14  ;;  %s507_s4 = sshll.u32 %s608_s0, 4  ;;  %s508_s4 = int_to_ptr.vmem [resolvable:$true] %s507_s4 }
   0x8   :  { %v70_v21 = vsub.s32 4, %v53_v14  ;;  %v74_v22 = vsub.s32 5, %v53_v14  ;;  %v78_v24 = vsub.s32 6, %v53_v14  ;;  %v82_v25 = vsub.s32 7, %v53_v14  ;;  %s584_s18 = scalar_lea.vmem %s508_s4, 128  ;;  %p589_p1 = scmp.lt.s32.totalorder %s508_s4, %s508_s4 }
   0x9   :  { %v55_v27 = vrot.slane %v22_v23, %v54_v17  ;;  %v59_v28 = vrot.slane %v22_v23, %v58_v18  ;;  %v63_v29 = vrot.slane %v22_v23, %v62_v19  ;;  %v67_v30 = vrot.slane %v22_v23, %v66_v20  ;;  %p585_p0 = scmp.ne.s32.totalorder %s508_s4, %s584_s18  ;;  %p590_p2 = scmp.lt.s32.totalorder %s584_s18, %s584_s18 }
   0xa   :  { %48 = vperm.xlu1 %519, %v26_v5   ;;  %131 = vperm.xlu0 %518, %v28_v6   ;;  %v71_v31 = vrot.slane %v22_v23, %v70_v21  ;;  %v75_v32 = vrot.slane %v22_v23, %v74_v22  ;;  %v79_v34 = vrot.slane %v22_v23, %v78_v24 }
   0xb   :  { %v83_v35 = vrot.slane %v22_v23, %v82_v25  ;;  %v683_v38 = vsub.s32 %v456_v26, %v53_v14  ;;  %p591_p3 = por %p590_p2, %p589_p1 }
   0xd   :  { %p592_p4 = pnand %p591_p3, %p585_p0 }
   0xe   :  { %141 = vperm.xlu1 %519, %v30_v7   ;;  %136 = vperm.xlu0 %518, %v29_v8  }
  0x12   :  { %315 = vperm.xlu1 %519, %v305_v9   ;;  %310 = vperm.xlu0 %518, %v304_v10  }
  0x16   :  { %325 = vperm.xlu1 %519, %v307_v11   ;;  %320 = vperm.xlu0 %518, %v306_v12  }
  0x7d   :  { %v44_v33 = vpop.permute.xlu1 %43  ;;  %v34_v36 = vpop.permute.xlu0 %33 }
  0x7e   :  { %v685_v39 = vmul.f32 %v55_v27, %v44_v33  ;;  %v687_v40 = vmul.f32 %v59_v28, %v44_v33  ;;  %v689_v41 = vmul.f32 %v63_v29, %v44_v33  ;;  %v691_v42 = vmul.f32 %v67_v30, %v44_v33 }
  0x7f   :  { %v693_v43 = vmul.f32 %v71_v31, %v44_v33  ;;  %v695_v44 = vmul.f32 %v75_v32, %v44_v33  ;;  %v697_v45 = vmul.f32 %v79_v34, %v44_v33  ;;  %v699_v46 = vmul.f32 %v83_v35, %v44_v33 }
  0x80   :  { %v92_v47 = vmul.f32 %v55_v27, %v34_v36  ;;  %v93_v48 = vmul.f32 %v59_v28, %v34_v36  ;;  %v94_v49 = vmul.f32 %v63_v29, %v34_v36  ;;  %v95_v50 = vmul.f32 %v67_v30, %v34_v36 }
  0x81   :  { %v96_v51 = vmul.f32 %v71_v31, %v34_v36  ;;  %v97_v52 = vmul.f32 %v75_v32, %v34_v36  ;;  %v98_v53 = vmul.f32 %v79_v34, %v34_v36  ;;  %v99_v54 = vmul.f32 %v83_v35, %v34_v36  ;;  %v127_v55 = vpop.permute.xlu1 %126  ;;  %v39_v60 = vpop.permute.xlu0 %38 }
  0x82   :  { %v144_v56 = vadd.f32 %v127_v55, %v92_v47  ;;  %v145_v57 = vadd.f32 %v127_v55, %v93_v48  ;;  %v146_v58 = vadd.f32 %v127_v55, %v94_v49  ;;  %v147_v59 = vadd.f32 %v127_v55, %v95_v50 }
  0x83   :  { %v148_v61 = vadd.f32 %v127_v55, %v96_v51  ;;  %v149_v62 = vadd.f32 %v127_v55, %v97_v52  ;;  %v150_v63 = vadd.f32 %v127_v55, %v98_v53  ;;  %v151_v0 = vadd.f32 %v127_v55, %v99_v54 }
  0x84   :  { %v176_v1 = vmul.f32 0.5, %v144_v56  ;;  %v177_v2 = vmul.f32 0.5, %v145_v57  ;;  %v178_v3 = vmul.f32 0.5, %v146_v58  ;;  %v179_v4 = vmul.f32 0.5, %v147_v59 }
  0x85   :  { %v180_v5 = vmul.f32 0.5, %v148_v61  ;;  %v181_v6 = vmul.f32 0.5, %v149_v62  ;;  %v182_v7 = vmul.f32 0.5, %v150_v63  ;;  %v183_v8 = vmul.f32 0.5, %v151_v0  ;;  %v49_v9 = vpop.permute.xlu1 %48  ;;  %v132_v19 = vpop.permute.xlu0 %131 }
  0x86   :  { %520 = vtanh.f32 %v176_v1  ;;  %v100_v10 = vmul.f32 %v55_v27, %v39_v60  ;;  %v101_v11 = vmul.f32 %v59_v28, %v39_v60  ;;  %v102_v12 = vmul.f32 %v63_v29, %v39_v60 }
  0x87   :  { %522 = vtanh.f32 %v177_v2  ;;  %v103_v13 = vmul.f32 %v67_v30, %v39_v60  ;;  %v104_v14 = vmul.f32 %v71_v31, %v39_v60  ;;  %v105_v15 = vmul.f32 %v75_v32, %v39_v60 }
  0x88   :  { %524 = vtanh.f32 %v178_v3  ;;  %v106_v16 = vmul.f32 %v79_v34, %v39_v60  ;;  %v107_v17 = vmul.f32 %v83_v35, %v39_v60  ;;  %v116_v18 = vmul.f32 %v55_v27, %v49_v9 }
  0x89   :  { %526 = vtanh.f32 %v179_v4  ;;  %v117_v20 = vmul.f32 %v59_v28, %v49_v9  ;;  %v118_v21 = vmul.f32 %v63_v29, %v49_v9  ;;  %v119_v22 = vmul.f32 %v67_v30, %v49_v9  ;;  %v142_v52 = vpop.permute.xlu1 %141  ;;  %v137_v63 = vpop.permute.xlu0 %136 }
  0x8a   :  { %528 = vtanh.f32 %v180_v5  ;;  %v120_v23 = vmul.f32 %v71_v31, %v49_v9  ;;  %v121_v24 = vmul.f32 %v75_v32, %v49_v9  ;;  %v122_v25 = vmul.f32 %v79_v34, %v49_v9 }
  0x8b   :  { %530 = vtanh.f32 %v181_v6  ;;  %v123_v26 = vmul.f32 %v83_v35, %v49_v9  ;;  %v152_v33 = vadd.f32 %v132_v19, %v100_v10  ;;  %v153_v36 = vadd.f32 %v132_v19, %v101_v11 }
  0x8c   :  { %532 = vtanh.f32 %v182_v7  ;;  %v154_v47 = vadd.f32 %v132_v19, %v102_v12  ;;  %v155_v48 = vadd.f32 %v132_v19, %v103_v13  ;;  %v156_v49 = vadd.f32 %v132_v19, %v104_v14 }
  0x8d   :  { %534 = vtanh.f32 %v183_v8  ;;  %v157_v50 = vadd.f32 %v132_v19, %v105_v15  ;;  %v158_v27 = vadd.f32 %v132_v19, %v106_v16  ;;  %v159_v51 = vadd.f32 %v132_v19, %v107_v17 }
  0x8e   :  { %v184_v28 = vmul.f32 0.5, %v152_v33  ;;  %v185_v29 = vmul.f32 0.5, %v153_v36  ;;  %v186_v30 = vmul.f32 0.5, %v154_v47  ;;  %v187_v53 = vmul.f32 0.5, %v155_v48 }
  0x8f   :  { %v188_v31 = vmul.f32 0.5, %v156_v49  ;;  %v189_v32 = vmul.f32 0.5, %v157_v50  ;;  %v190_v34 = vmul.f32 0.5, %v158_v27  ;;  %v191_v54 = vmul.f32 0.5, %v159_v51 }
  0x90   :  { %536 = vtanh.f32 %v184_v28  ;;  %v168_v35 = vadd.f32 %v142_v52, %v116_v18  ;;  %v169_v55 = vadd.f32 %v142_v52, %v117_v20  ;;  %v170_v56 = vadd.f32 %v142_v52, %v118_v21 }
  0x91   :  { %538 = vtanh.f32 %v185_v29  ;;  %v171_v57 = vadd.f32 %v142_v52, %v119_v22  ;;  %v172_v58 = vadd.f32 %v142_v52, %v120_v23  ;;  %v173_v59 = vadd.f32 %v142_v52, %v121_v24 }
  0x92   :  { %540 = vtanh.f32 %v186_v30  ;;  %v174_v60 = vadd.f32 %v142_v52, %v122_v25  ;;  %v175_v61 = vadd.f32 %v142_v52, %v123_v26  ;;  %v200_v62 = vmul.f32 0.5, %v168_v35 }
  0x93   :  { %v521_v0 = vpop.eup %520  ;;  %542 = vtanh.f32 %v187_v53  ;;  %v201_v1 = vmul.f32 0.5, %v169_v55  ;;  %v202_v2 = vmul.f32 0.5, %v170_v56  ;;  %v203_v3 = vmul.f32 0.5, %v171_v57  ;;  %v316_v57 = vpop.permute.xlu1 %315 }
  0x94   :  { %v523_v4 = vpop.eup %522  ;;  %544 = vtanh.f32 %v188_v31  ;;  %v204_v5 = vmul.f32 0.5, %v172_v58  ;;  %v205_v6 = vmul.f32 0.5, %v173_v59  ;;  %v206_v7 = vmul.f32 0.5, %v174_v60 }
  0x95   :  { %v525_v8 = vpop.eup %524  ;;  %546 = vtanh.f32 %v189_v32  ;;  %v207_v9 = vmul.f32 0.5, %v175_v61  ;;  %v160_v10 = vadd.f32 %v137_v63, %v685_v39  ;;  %v161_v11 = vadd.f32 %v137_v63, %v687_v40 }
  0x96   :  { %v527_v12 = vpop.eup %526  ;;  %548 = vtanh.f32 %v190_v34  ;;  %v162_v13 = vadd.f32 %v137_v63, %v689_v41  ;;  %v163_v14 = vadd.f32 %v137_v63, %v691_v42  ;;  %v164_v15 = vadd.f32 %v137_v63, %v693_v43 }
  0x97   :  { %v529_v16 = vpop.eup %528  ;;  %550 = vtanh.f32 %v191_v54  ;;  %v165_v17 = vadd.f32 %v137_v63, %v695_v44  ;;  %v166_v18 = vadd.f32 %v137_v63, %v697_v45  ;;  %v167_v19 = vadd.f32 %v137_v63, %v699_v46 }
  0x98   :  { %v531_v20 = vpop.eup %530  ;;  %552 = vtanh.f32 %v200_v62  ;;  %v192_v39 = vmul.f32 0.5, %v160_v10  ;;  %v193_v40 = vmul.f32 0.5, %v161_v11  ;;  %v194_v21 = vmul.f32 0.5, %v162_v13  ;;  %v311_v13 = vpop.permute.xlu0 %310 }
  0x99   :  { %v533_v22 = vpop.eup %532  ;;  %554 = vtanh.f32 %v201_v1  ;;  %v195_v41 = vmul.f32 0.5, %v163_v14  ;;  %v196_v23 = vmul.f32 0.5, %v164_v15  ;;  %v197_v42 = vmul.f32 0.5, %v165_v17 }
  0x9a   :  { %v535_v24 = vpop.eup %534  ;;  %556 = vtanh.f32 %v202_v2  ;;  %v198_v43 = vmul.f32 0.5, %v166_v18  ;;  %v199_v25 = vmul.f32 0.5, %v167_v19  ;;  %v240_v26 = vadd.f32 1.0, %v521_v0 }
  0x9b   :  { %558 = vtanh.f32 %v203_v3  ;;  %v241_v44 = vadd.f32 1.0, %v523_v4  ;;  %v242_v45 = vadd.f32 1.0, %v525_v8  ;;  %v243_v33 = vadd.f32 1.0, %v527_v12 }
  0x9c   :  { %560 = vtanh.f32 %v204_v5  ;;  %v244_v46 = vadd.f32 1.0, %v529_v16  ;;  %v245_v36 = vadd.f32 1.0, %v531_v20  ;;  %v246_v47 = vadd.f32 1.0, %v533_v22 }
  0x9d   :  { %v537_v48 = vpop.eup %536  ;;  %562 = vtanh.f32 %v205_v6  ;;  %v247_v49 = vadd.f32 1.0, %v535_v24  ;;  %v272_v50 = vmul.f32 0.5, %v240_v26  ;;  %v273_v27 = vmul.f32 0.5, %v241_v44 }
  0x9e   :  { %v539_v51 = vpop.eup %538  ;;  %564 = vtanh.f32 %v206_v7  ;;  %v248_v52 = vadd.f32 1.0, %v537_v48  ;;  %v274_v28 = vmul.f32 0.5, %v242_v45  ;;  %v275_v29 = vmul.f32 0.5, %v243_v33 }
  0x9f   :  { %v541_v30 = vpop.eup %540  ;;  %566 = vtanh.f32 %v207_v9  ;;  %v249_v53 = vadd.f32 1.0, %v539_v51  ;;  %v276_v31 = vmul.f32 0.5, %v244_v46  ;;  %v277_v32 = vmul.f32 0.5, %v245_v36 }
  0xa0   :  { %v543_v34 = vpop.eup %542  ;;  %568 = vtanh.f32 %v192_v39  ;;  %v250_v54 = vadd.f32 1.0, %v541_v30  ;;  %v280_v35 = vmul.f32 0.5, %v248_v52  ;;  %v278_v55 = vmul.f32 0.5, %v246_v47 }
  0xa1   :  { %v545_v56 = vpop.eup %544  ;;  %570 = vtanh.f32 %v193_v40  ;;  %v251_v58 = vadd.f32 1.0, %v543_v34  ;;  %v281_v59 = vmul.f32 0.5, %v249_v53  ;;  %v279_v60 = vmul.f32 0.5, %v247_v49 }
  0xa2   :  { %v547_v61 = vpop.eup %546  ;;  %572 = vtanh.f32 %v194_v21  ;;  %v252_v62 = vadd.f32 1.0, %v545_v56  ;;  %v282_v63 = vmul.f32 0.5, %v250_v54  ;;  %v336_v0 = vmul.f32 %v316_v57, %v280_v35 }
  0xa3   :  { %v549_v1 = vpop.eup %548  ;;  %574 = vtanh.f32 %v195_v41  ;;  %v253_v2 = vadd.f32 1.0, %v547_v61  ;;  %v283_v3 = vmul.f32 0.5, %v251_v58  ;;  %v337_v4 = vmul.f32 %v316_v57, %v281_v59 }
  0xa4   :  { %v551_v5 = vpop.eup %550  ;;  %576 = vtanh.f32 %v196_v23  ;;  %v254_v6 = vadd.f32 1.0, %v549_v1  ;;  %v284_v7 = vmul.f32 0.5, %v252_v62  ;;  %v709_v8 = vmul.f32 %v316_v57, %v282_v63 }
  0xa5   :  { %v553_v9 = vpop.eup %552  ;;  %578 = vtanh.f32 %v197_v42  ;;  %v255_v10 = vadd.f32 1.0, %v551_v5  ;;  %v285_v11 = vmul.f32 0.5, %v253_v2  ;;  %v339_v12 = vmul.f32 %v316_v57, %v283_v3 }
  0xa6   :  { %v555_v14 = vpop.eup %554  ;;  %580 = vtanh.f32 %v198_v43  ;;  %v286_v15 = vmul.f32 0.5, %v254_v6  ;;  %v711_v16 = vmul.f32 %v316_v57, %v284_v7  ;;  %v328_v17 = vmul.f32 %v311_v13, %v272_v50 }
  0xa7   :  { %v557_v18 = vpop.eup %556  ;;  %582 = vtanh.f32 %v199_v25  ;;  %v287_v19 = vmul.f32 0.5, %v255_v10  ;;  %v713_v20 = vmul.f32 %v316_v57, %v285_v11  ;;  %v329_v39 = vmul.f32 %v311_v13, %v273_v27 }
  0xa8   :  { %v559_v40 = vpop.eup %558  ;;  %v715_v21 = vmul.f32 %v316_v57, %v286_v15  ;;  %v330_v22 = vmul.f32 %v311_v13, %v274_v28  ;;  %v331_v41 = vmul.f32 %v311_v13, %v275_v29  ;;  %v332_v23 = vmul.f32 %v311_v13, %v276_v31  ;;  %v326_v31 = vpop.permute.xlu1 %325 }
  0xa9   :  { %v561_v42 = vpop.eup %560  ;;  %v717_v24 = vmul.f32 %v316_v57, %v287_v19  ;;  %v333_v43 = vmul.f32 %v311_v13, %v277_v32  ;;  %v719_v26 = vmul.f32 %v311_v13, %v278_v55  ;;  %v721_v44 = vmul.f32 %v311_v13, %v279_v60 }
  0xaa   :  { %v563_v45 = vpop.eup %562  ;;  %v264_v25 = vadd.f32 1.0, %v553_v9  ;;  %v265_v33 = vadd.f32 1.0, %v555_v14  ;;  %v266_v46 = vadd.f32 1.0, %v557_v18  ;;  %v267_v36 = vadd.f32 1.0, %v559_v40 }
  0xab   :  { %v565_v47 = vpop.eup %564  ;;  %v268_v48 = vadd.f32 1.0, %v561_v42  ;;  %v269_v49 = vadd.f32 1.0, %v563_v45  ;;  %v360_v50 = vadd.f32 %v336_v0, %v328_v17  ;;  %v369_v27 = vadd.f32 %v337_v4, %v329_v39  ;;  %v321_v39 = vpop.permute.xlu0 %320 }
  0xac   :  { %v567_v51 = vpop.eup %566  ;;  %v270_v52 = vadd.f32 1.0, %v565_v47  ;;  %v296_v28 = vmul.f32 0.5, %v264_v25  ;;  %v297_v29 = vmul.f32 0.5, %v265_v33  ;;  %v298_v30 = vmul.f32 0.5, %v266_v46 }
  0xad   :  { %v569_v53 = vpop.eup %568  ;;  %v271_v32 = vadd.f32 1.0, %v567_v51  ;;  %v299_v34 = vmul.f32 0.5, %v267_v36  ;;  %v300_v54 = vmul.f32 0.5, %v268_v48  ;;  %v301_v35 = vmul.f32 0.5, %v269_v49 }
  0xae   :  { %v571_v55 = vpop.eup %570  ;;  %v302_v56 = vmul.f32 0.5, %v270_v52  ;;  %v352_v57 = vmul.f32 %v326_v31, %v296_v28  ;;  %v353_v58 = vmul.f32 %v326_v31, %v297_v29  ;;  %v354_v59 = vmul.f32 %v326_v31, %v298_v30 }
  0xaf   :  { %v573_v60 = vpop.eup %572  ;;  %v303_v61 = vmul.f32 0.5, %v271_v32  ;;  %v355_v62 = vmul.f32 %v326_v31, %v299_v34  ;;  %v356_v63 = vmul.f32 %v326_v31, %v300_v54  ;;  %v357_v0 = vmul.f32 %v326_v31, %v301_v35 }
  0xb0   :  { %v575_v1 = vpop.eup %574  ;;  %v358_v2 = vmul.f32 %v326_v31, %v302_v56  ;;  %v256_v3 = vadd.f32 1.0, %v569_v53  ;;  %v257_v4 = vadd.f32 1.0, %v571_v55  ;;  %v258_v5 = vadd.f32 1.0, %v573_v60 }
  0xb1   :  { %v577_v6 = vpop.eup %576  ;;  %v359_v7 = vmul.f32 %v326_v31, %v303_v61  ;;  %v259_v9 = vadd.f32 1.0, %v575_v1  ;;  %v378_v10 = vadd.f32 %v709_v8, %v330_v22  ;;  %v387_v11 = vadd.f32 %v339_v12, %v331_v41 }
  0xb2   :  { %v579_v13 = vpop.eup %578  ;;  %v260_v14 = vadd.f32 1.0, %v577_v6  ;;  %v288_v15 = vmul.f32 0.5, %v256_v3  ;;  %v289_v17 = vmul.f32 0.5, %v257_v4  ;;  %v290_v18 = vmul.f32 0.5, %v258_v5 }
  0xb3   :  { %v581_v19 = vpop.eup %580  ;;  %v261_v40 = vadd.f32 1.0, %v579_v13  ;;  %v291_v42 = vmul.f32 0.5, %v259_v9  ;;  %v396_v45 = vadd.f32 %v711_v16, %v332_v23  ;;  %v405_v25 = vadd.f32 %v713_v20, %v333_v43 }
  0xb4   :  { %v583_v33 = vpop.eup %582  ;;  %v262_v46 = vadd.f32 1.0, %v581_v19  ;;  %v292_v36 = vmul.f32 0.5, %v260_v14  ;;  %v344_v47 = vmul.f32 %v321_v39, %v288_v15  ;;  %v345_v48 = vmul.f32 %v321_v39, %v289_v17 }
  0xb5   :  { %v263_v8 = vadd.f32 1.0, %v583_v33  ;;  %v293_v12 = vmul.f32 0.5, %v261_v40  ;;  %v346_v22 = vmul.f32 %v321_v39, %v290_v18  ;;  %v347_v41 = vmul.f32 %v321_v39, %v291_v42 }
  0xb6   :  { %v294_v49 = vmul.f32 0.5, %v262_v46  ;;  %v348_v51 = vmul.f32 %v321_v39, %v292_v36  ;;  %v361_v52 = vadd.f32 %v360_v50, %v344_v47  ;;  %v370_v28 = vadd.f32 %v369_v27, %v345_v48 }
  0xb7   :  { %v295_v29 = vmul.f32 0.5, %v263_v8  ;;  %v349_v30 = vmul.f32 %v321_v39, %v293_v12  ;;  %v379_v53 = vadd.f32 %v378_v10, %v346_v22  ;;  %v388_v31 = vadd.f32 %v387_v11, %v347_v41 }
  0xb8   :  { %v350_v16 = vmul.f32 %v321_v39, %v294_v49  ;;  %v362_v23 = vadd.f32 %v361_v52, %v352_v57  ;;  %v371_v20 = vadd.f32 %v370_v28, %v353_v58  ;;  %v397_v43 = vadd.f32 %v396_v45, %v348_v51 }
  0xb9   :  { %v351_v32 = vmul.f32 %v321_v39, %v295_v29  ;;  %v380_v34 = vadd.f32 %v379_v53, %v354_v59  ;;  %v389_v54 = vadd.f32 %v388_v31, %v355_v62  ;;  %v406_v35 = vadd.f32 %v405_v25, %v349_v30 }
  0xba   :  { %v398_v55 = vadd.f32 %v397_v43, %v356_v63  ;;  %v414_v56 = vadd.f32 %v715_v21, %v719_v26  ;;  %v423_v50 = vadd.f32 %v717_v24, %v721_v44  ;;  %v363_v27 = vrot.slane %v362_v23, 4 }
  0xbb   :  { %v407_v60 = vadd.f32 %v406_v35, %v357_v0  ;;  %v372_v61 = vrot.slane %v371_v20, 4  ;;  %v381_v1 = vrot.slane %v380_v34, 4  ;;  %v390_v3 = vrot.slane %v389_v54, 4 }
  0xbc   :  { %v415_v4 = vadd.f32 %v414_v56, %v350_v16  ;;  %v424_v57 = vadd.f32 %v423_v50, %v351_v32  ;;  %v364_v58 = vadd.f32 %v363_v27, %v362_v23  ;;  %v399_v5 = vrot.slane %v398_v55, 4 }
  0xbd   :  { %v373_v6 = vadd.f32 %v372_v61, %v371_v20  ;;  %v382_v59 = vadd.f32 %v381_v1, %v380_v34  ;;  %v391_v62 = vadd.f32 %v390_v3, %v389_v54  ;;  %v408_v9 = vrot.slane %v407_v60, 4 }
  0xbe   :  { %v416_v63 = vadd.f32 %v415_v4, %v358_v2  ;;  %v425_v10 = vadd.f32 %v424_v57, %v359_v7  ;;  %v365_v11 = vrot.slane %v364_v58, 2  ;;  %v400_v21 = vadd.f32 %v399_v5, %v398_v55 }
  0xbf   :  { %v374_v26 = vrot.slane %v373_v6, 2  ;;  %v383_v13 = vrot.slane %v382_v59, 2  ;;  %v392_v24 = vrot.slane %v391_v62, 2  ;;  %v409_v44 = vadd.f32 %v408_v9, %v407_v60 }
  0xc0   :  { %v366_v0 = vadd.f32 %v365_v11, %v364_v58  ;;  %v401_v14 = vrot.slane %v400_v21, 2  ;;  %v417_v15 = vrot.slane %v416_v63, 4  ;;  %v426_v17 = vrot.slane %v425_v10, 4 }
  0xc1   :  { %v375_v18 = vadd.f32 %v374_v26, %v373_v6  ;;  %v384_v19 = vadd.f32 %v383_v13, %v382_v59  ;;  %v393_v39 = vadd.f32 %v392_v24, %v391_v62  ;;  %v410_v40 = vrot.slane %v409_v44, 2 }
  0xc2   :  { %v367_v42 = vrot.slane %v366_v0, 1  ;;  %v402_v45 = vadd.f32 %v401_v14, %v400_v21  ;;  %v418_v25 = vadd.f32 %v417_v15, %v416_v63  ;;  %v427_v33 = vadd.f32 %v426_v17, %v425_v10 }
  0xc3   :  { %v376_v2 = vrot.slane %v375_v18, 1  ;;  %v385_v7 = vrot.slane %v384_v19, 1  ;;  %v394_v46 = vrot.slane %v393_v39, 1  ;;  %v411_v36 = vadd.f32 %v410_v40, %v409_v44 }
  0xc4   :  { %v368_v47 = vadd.f32 %v367_v42, %v366_v0  ;;  %v403_v48 = vrot.slane %v402_v45, 1  ;;  %v419_v8 = vrot.slane %v418_v25, 2  ;;  %v428_v12 = vrot.slane %v427_v33, 2 }
  0xc5   :  { %v377_v22 = vadd.f32 %v376_v2, %v375_v18  ;;  %v386_v41 = vadd.f32 %v385_v7, %v384_v19  ;;  %v395_v49 = vadd.f32 %v394_v46, %v393_v39  ;;  %v412_v51 = vrot.slane %v411_v36, 1 }
  0xc6   :  { %v404_v52 = vadd.f32 %v403_v48, %v402_v45  ;;  %v420_v28 = vadd.f32 %v419_v8, %v418_v25  ;;  %v429_v29 = vadd.f32 %v428_v12, %v427_v33  ;;  %v434_v30 = vadd.f32 %v681_v37, %v368_v47 }
  0xc7   :  { %v413_v53 = vadd.f32 %v412_v51, %v411_v36  ;;  %v435_v31 = vadd.f32 %v681_v37, %v377_v22  ;;  %v436_v16 = vadd.f32 %v681_v37, %v386_v41  ;;  %v437_v23 = vadd.f32 %v681_v37, %v395_v49 }
  0xc8   :  { %v421_v20 = vrot.slane %v420_v28, 1  ;;  %v430_v43 = vrot.slane %v429_v29, 1  ;;  %v438_v32 = vadd.f32 %v681_v37, %v404_v52 }
  0xc9   :  { %v439_v34 = vadd.f32 %v681_v37, %v413_v53  ;;  %v450_v54 = vcombine.low %v434_v30, %v435_v31  ;;  %v451_v35 = vcombine.low %v436_v16, %v437_v23 }
  0xca   :  { %v422_v55 = vadd.f32 %v421_v20, %v420_v28  ;;  %v431_v56 = vadd.f32 %v430_v43, %v429_v29 }
  0xcb   :  { %v452_v50 = vcombine.low %v438_v32, %v439_v34  ;;  %v460_v27 = vrot.slane %v450_v54, %v683_v38  ;;  %v467_v60 = vrot.slane %v451_v35, %v683_v38 }
  0xcc   :  { %v440_v61 = vadd.f32 %v681_v37, %v422_v55  ;;  %v441_v1 = vadd.f32 %v681_v37, %v431_v56 }
  0xcd   :  { %v474_v4 = vrot.slane %v452_v50, %v683_v38  ;;  %v482_v57 = vcombine.low %v460_v27, %v467_v60 }
  0xce   :  { %v453_v3 = vcombine.low %v440_v61, %v441_v1 }
  0xcf   :  { %v490_v6 = vrot.slane %v482_v57, %v683_v38 }
  0xd0   :  { %v481_v58 = vrot.slane %v453_v3, %v683_v38 }
  0xd2   :  { %v483_v5 = vcombine.low %v474_v4, %v481_v58 }
  0xd4   :  { %v497_v59 = vrot.slane %v483_v5, %v683_v38 }
  0xd6   :  { %v498_v62 = vcombine.low %v490_v6, %v497_v59 }
  0xd8   :  { %500 = vst [vmem:[#allocation3] sm:$0xff] %v498_v62 }
  0xd9   :  { %595 = shalt.err (!%p592_p4)
}
  0xda   :  { %510 = dma.vmem_to_hbm [thread:$0]  %s508_s4, 128, %s752_s5, [#allocation4]  }
  0xdb   :  { %604 = dma.done.wait [#allocation4], 128  }
  0xdc   :  { %605 = vsyncadd [#allocation4], 4294967168 }
  0xdd   :  { %514 = vsyncpa [#allocation4], 1 }

</bundles_post_ra>
